<compile_context>
chip_gen: v7x
topology: tpu7x:2x2x1
jax: 0.10.0
libtpu: 0.0.40
codegen_flags: <defaults>
</compile_context>

<pallas_src>
import math

import jax
import jax.numpy as jnp
from jax.experimental import pallas as pl
from jax.experimental.pallas import tpu as pltpu

H1, H2 = 400, 300          # hidden sizes fixed by the module
OUT_PAD = 128              # lane-dense padded fc3 width (real output = column 0)


def _critic_kernel(s_ref, a_ref, w1s_ref, w1a_ref, b1_ref,
                   w2_ref, b2_ref, w3_ref, b3_ref, o_ref):
    """Fused 3-layer MLP on one batch tile; weights stay VMEM-resident."""
    # Layer 1: the concat is folded into two dots on the split fc1 weight.
    h1 = (
        jnp.dot(s_ref[...].astype(jnp.bfloat16), w1s_ref[...],
                preferred_element_type=jnp.float32)
        + jnp.dot(a_ref[...].astype(jnp.bfloat16), w1a_ref[...],
                  preferred_element_type=jnp.float32)
        + b1_ref[...]
    )
    h1 = jnp.maximum(h1, 0.0)          # relu in f32 (keeps v5e's VPU path clean)

    h2 = jnp.dot(h1.astype(jnp.bfloat16), w2_ref[...],
                 preferred_element_type=jnp.float32) + b2_ref[...]
    h2 = jnp.maximum(h2, 0.0)

    # fc3 padded to 128 lanes -> unmasked lane-dense stores.
    o_ref[...] = jnp.dot(h2.astype(jnp.bfloat16), w3_ref[...],
                         preferred_element_type=jnp.float32) + b3_ref[...]


def pack_critic_params(params, state_dim):
    """One-time repack: split fc1, cast weights to bf16, pad fc3 to 128 lanes."""
    w1, b1, w2, b2, w3, b3 = params
    w1 = jnp.asarray(w1, jnp.float32)
    w1_s = w1[:state_dim, :].astype(jnp.bfloat16)          # (state_dim, 400)
    w1_a = w1[state_dim:, :].astype(jnp.bfloat16)          # (action_dim, 400)
    b1 = jnp.asarray(b1, jnp.float32).reshape(1, H1)
    w2 = jnp.asarray(w2, jnp.bfloat16)                     # (400, 300)
    b2 = jnp.asarray(b2, jnp.float32).reshape(1, H2)
    w3 = jnp.asarray(w3, jnp.float32)
    b3 = jnp.asarray(b3, jnp.float32).reshape(1, -1)
    w3p = jnp.zeros((H2, OUT_PAD), jnp.bfloat16).at[:, : w3.shape[1]].set(
        w3.astype(jnp.bfloat16))
    b3p = jnp.zeros((1, OUT_PAD), jnp.float32).at[:, : b3.shape[1]].set(b3)
    return (w1_s, w1_a, b1, w2, b2, w3p, b3p)


def critic_forward(state, action, packed_params):
    """state: (B, state_dim) f32, action: (B, action_dim) f32 -> (B, 1) f32."""
    w1_s, w1_a, b1, w2, b2, w3, b3 = packed_params
    state = state.astype(jnp.float32)
    action = action.astype(jnp.float32)
    B, state_dim = state.shape
    action_dim = action.shape[1]

    # Batch tile: 256 rows fills a v6e/v7x MXU pass, 128 saturates v5e; tiny
    # batches run as a single full-extent step.
    if B >= 256 and B % 256 == 0:
        tile_b = 256
    elif B >= 128 and B % 128 == 0:
        tile_b = 128
    else:
        tile_b = min(B, 128)
    num_tiles = pl.cdiv(B, tile_b)
    b_pad = num_tiles * tile_b
    if b_pad != B:
        pad = b_pad - B
        state = jnp.pad(state, ((0, pad), (0, 0)))
        action = jnp.pad(action, ((0, pad), (0, 0)))

    flops = 2 * b_pad * (state_dim * H1 + action_dim * H1 + H1 * H2 + H2 * OUT_PAD)
    bytes_accessed = (
        2 * (w1_s.size + w1_a.size + w2.size + w3.size)       # bf16 weights
        + 4 * (b1.size + b2.size + b3.size)                   # f32 biases
        + 4 * (state.size + action.size)                      # f32 activations in
        + 4 * b_pad * OUT_PAD                                 # f32 output
    )
    cost = pl.CostEstimate(flops=flops, transcendentals=0,
                           bytes_accessed=bytes_accessed)

    def weight_spec(shape):
        # Constant block index => weight tile stays resident in VMEM across
        # all grid steps (no re-DMA per batch tile).
        return pl.BlockSpec(shape, lambda i: (0, 0))

    out = pl.pallas_call(
        _critic_kernel,
        out_shape=jax.ShapeDtypeStruct((b_pad, OUT_PAD), jnp.float32),
        grid=(num_tiles,),
        in_specs=[
            pl.BlockSpec((tile_b, state_dim), lambda i: (i, 0)),
            pl.BlockSpec((tile_b, action_dim), lambda i: (i, 0)),
            weight_spec((state_dim, H1)),
            weight_spec((action_dim, H1)),
            weight_spec((1, H1)),
            weight_spec((H1, H2)),
            weight_spec((1, H2)),
            weight_spec((H2, OUT_PAD)),
            weight_spec((1, OUT_PAD)),
        ],
        out_specs=pl.BlockSpec((tile_b, OUT_PAD), lambda i: (i, 0)),
        compiler_params=pltpu.CompilerParams(
            dimension_semantics=("parallel",)),
        cost_estimate=cost,
    )(state, action, w1_s, w1_a, b1, w2, b2, w3, b3)

    return out[:B, :1]


def init_critic_params(key, state_dim, action_dim):
    """Deterministic init matching nn.Linear's default U(-1/sqrt(fan_in), +).

    Weights stored as (in_features, out_features) == PyTorch weight.T.
    """
    dims = [(state_dim + action_dim, H1), (H1, H2), (H2, 1)]
    params = []
    for fan_in, fan_out in dims:
        key, kw, kb = jax.random.split(key, 3)
        bound = 1.0 / math.sqrt(fan_in)
        w = jax.random.uniform(kw, (fan_in, fan_out), jnp.float32, -bound, bound)
        b = jax.random.uniform(kb, (1, fan_out), jnp.float32, -bound, bound)
        params += [w, b]
    return tuple(params)


def critic_reference(state, action, packed_params):
    """f32 reference using the same (bf16-rounded) weights the kernel sees."""
    w1_s, w1_a, b1, w2, b2, w3p, b3p = packed_params
    x = jnp.concatenate([state, action], axis=1).astype(jnp.float32)
    w1 = jnp.concatenate([w1_s, w1_a], axis=0).astype(jnp.float32)
    h1 = jnp.maximum(x @ w1 + b1, 0.0)
    h2 = jnp.maximum(h1 @ w2.astype(jnp.float32) + b2, 0.0)
    out = h2 @ w3p.astype(jnp.float32) + b3p
    return out[:, :1]


if __name__ == "__main__":
    # Humanoid-v4 dims: obs=376, act=17 (hidden sizes 400/300 fixed by module).
    state_dim, action_dim = 376, 17

    key = jax.random.PRNGKey(0)
    kp, ks, ka, ks2, ka2 = jax.random.split(key, 5)
    params = init_critic_params(kp, state_dim, action_dim)
    packed = pack_critic_params(params, state_dim)

    # Small-batch check (single grid step, full-extent batch block).
    batch = 4
    state = jax.random.normal(ks, (batch, state_dim), jnp.float32)
    action = jax.random.uniform(ka, (batch, action_dim), jnp.float32, -1.0, 1.0)
    out = jax.block_until_ready(critic_forward(state, action, packed))
    ref = critic_reference(state, action, packed)
    assert out.shape == (batch, 1), out.shape
    assert jnp.allclose(out, ref, atol=3e-2, rtol=3e-2), (out, ref)

    # Training-size batch check (exercises the tiled 'parallel' grid path).
    batch2 = 384
    state2 = jax.random.normal(ks2, (batch2, state_dim), jnp.float32)
    action2 = jax.random.uniform(ka2, (batch2, action_dim), jnp.float32, -1.0, 1.0)
    out2 = jax.block_until_ready(critic_forward(state2, action2, packed))
    ref2 = critic_reference(state2, action2, packed)
    assert out2.shape == (batch2, 1), out2.shape
    assert jnp.allclose(out2, ref2, atol=3e-2, rtol=3e-2)

    print("KERNEL_OK")
</pallas_src>

<mosaic_0001>
module attributes {stable_mosaic.version = 11 : i64} {
  func.func @_critic_kernel(%arg0: i32, %arg1: memref<4x376xf32, #tpu.memory_space<vmem>>, %arg2: memref<4x17xf32, #tpu.memory_space<vmem>>, %arg3: memref<376x400xbf16, #tpu.memory_space<vmem>>, %arg4: memref<17x400xbf16, #tpu.memory_space<vmem>>, %arg5: memref<1x400xf32, #tpu.memory_space<vmem>>, %arg6: memref<400x300xbf16, #tpu.memory_space<vmem>>, %arg7: memref<1x300xf32, #tpu.memory_space<vmem>>, %arg8: memref<300x128xbf16, #tpu.memory_space<vmem>>, %arg9: memref<1x128xf32, #tpu.memory_space<vmem>>, %arg10: memref<4x128xf32, #tpu.memory_space<vmem>>) attributes {dimension_semantics = [#tpu.dimension_semantics<parallel>], iteration_bounds = array<i64: 1>, scalar_prefetch = 0 : i64, scratch_operands = 0 : i64, tpu.core_type = #tpu.core_type<tc>, window_params = [{transform_indices = @transform_0, window_bounds = array<i64: 4, 376>}, {transform_indices = @transform_1, window_bounds = array<i64: 4, 17>}, {pipeline_mode = #tpu.pipeline_mode<synchronous>, transform_indices = @transform_2, window_bounds = array<i64: 376, 400>}, {pipeline_mode = #tpu.pipeline_mode<synchronous>, transform_indices = @transform_3, window_bounds = array<i64: 17, 400>}, {pipeline_mode = #tpu.pipeline_mode<synchronous>, transform_indices = @transform_4, window_bounds = array<i64: 1, 400>}, {pipeline_mode = #tpu.pipeline_mode<synchronous>, transform_indices = @transform_5, window_bounds = array<i64: 400, 300>}, {pipeline_mode = #tpu.pipeline_mode<synchronous>, transform_indices = @transform_6, window_bounds = array<i64: 1, 300>}, {pipeline_mode = #tpu.pipeline_mode<synchronous>, transform_indices = @transform_7, window_bounds = array<i64: 300, 128>}, {pipeline_mode = #tpu.pipeline_mode<synchronous>, transform_indices = @transform_8, window_bounds = array<i64: 1, 128>}, {transform_indices = @transform_9, window_bounds = array<i64: 4, 128>}]} {
    %c0 = arith.constant 0 : index
    %c0_0 = arith.constant 0 : index
    %0 = vector.load %arg1[%c0, %c0_0] : memref<4x376xf32, #tpu.memory_space<vmem>>, vector<4x376xf32>
    %1 = arith.truncf %0 : vector<4x376xf32> to vector<4x376xbf16>
    %c0_1 = arith.constant 0 : index
    %c0_2 = arith.constant 0 : index
    %2 = vector.load %arg3[%c0_1, %c0_2] : memref<376x400xbf16, #tpu.memory_space<vmem>>, vector<376x400xbf16>
    %cst = arith.constant dense<0.000000e+00> : vector<4x400xf32>
    %3 = tpu.matmul %1, %2, %cst {dimension_numbers = #tpu.dot_dimension_numbers<[1], [0], [0], [1], [0, 0, 1, 1], [], []>} : vector<4x376xbf16>, vector<376x400xbf16>, vector<4x400xf32> -> vector<4x400xf32>
    %c0_3 = arith.constant 0 : index
    %c0_4 = arith.constant 0 : index
    %4 = vector.load %arg2[%c0_3, %c0_4] : memref<4x17xf32, #tpu.memory_space<vmem>>, vector<4x17xf32>
    %5 = arith.truncf %4 : vector<4x17xf32> to vector<4x17xbf16>
    %c0_5 = arith.constant 0 : index
    %c0_6 = arith.constant 0 : index
    %6 = vector.load %arg4[%c0_5, %c0_6] : memref<17x400xbf16, #tpu.memory_space<vmem>>, vector<17x400xbf16>
    %cst_7 = arith.constant dense<0.000000e+00> : vector<4x400xf32>
    %7 = tpu.matmul %5, %6, %cst_7 {dimension_numbers = #tpu.dot_dimension_numbers<[1], [0], [0], [1], [0, 0, 1, 1], [], []>} : vector<4x17xbf16>, vector<17x400xbf16>, vector<4x400xf32> -> vector<4x400xf32>
    %8 = arith.addf %3, %7 : vector<4x400xf32>
    %c0_8 = arith.constant 0 : index
    %c0_9 = arith.constant 0 : index
    %9 = vector.load %arg5[%c0_8, %c0_9] : memref<1x400xf32, #tpu.memory_space<vmem>>, vector<1x400xf32>
    %10 = vector.broadcast %9 : vector<1x400xf32> to vector<4x400xf32>
    %11 = arith.addf %8, %10 : vector<4x400xf32>
    %cst_10 = arith.constant 0.000000e+00 : f32
    %12 = vector.broadcast %cst_10 : f32 to vector<4x400xf32>
    %13 = arith.maximumf %11, %12 : vector<4x400xf32>
    %14 = arith.truncf %13 : vector<4x400xf32> to vector<4x400xbf16>
    %c0_11 = arith.constant 0 : index
    %c0_12 = arith.constant 0 : index
    %15 = vector.load %arg6[%c0_11, %c0_12] : memref<400x300xbf16, #tpu.memory_space<vmem>>, vector<400x300xbf16>
    %cst_13 = arith.constant dense<0.000000e+00> : vector<4x300xf32>
    %16 = tpu.matmul %14, %15, %cst_13 {dimension_numbers = #tpu.dot_dimension_numbers<[1], [0], [0], [1], [0, 0, 1, 1], [], []>} : vector<4x400xbf16>, vector<400x300xbf16>, vector<4x300xf32> -> vector<4x300xf32>
    %c0_14 = arith.constant 0 : index
    %c0_15 = arith.constant 0 : index
    %17 = vector.load %arg7[%c0_14, %c0_15] : memref<1x300xf32, #tpu.memory_space<vmem>>, vector<1x300xf32>
    %18 = vector.broadcast %17 : vector<1x300xf32> to vector<4x300xf32>
    %19 = arith.addf %16, %18 : vector<4x300xf32>
    %cst_16 = arith.constant 0.000000e+00 : f32
    %20 = vector.broadcast %cst_16 : f32 to vector<4x300xf32>
    %21 = arith.maximumf %19, %20 : vector<4x300xf32>
    %22 = arith.truncf %21 : vector<4x300xf32> to vector<4x300xbf16>
    %c0_17 = arith.constant 0 : index
    %c0_18 = arith.constant 0 : index
    %23 = vector.load %arg8[%c0_17, %c0_18] : memref<300x128xbf16, #tpu.memory_space<vmem>>, vector<300x128xbf16>
    %cst_19 = arith.constant dense<0.000000e+00> : vector<4x128xf32>
    %24 = tpu.matmul %22, %23, %cst_19 {dimension_numbers = #tpu.dot_dimension_numbers<[1], [0], [0], [1], [0, 0, 1, 1], [], []>} : vector<4x300xbf16>, vector<300x128xbf16>, vector<4x128xf32> -> vector<4x128xf32>
    %c0_20 = arith.constant 0 : index
    %c0_21 = arith.constant 0 : index
    %25 = vector.load %arg9[%c0_20, %c0_21] : memref<1x128xf32, #tpu.memory_space<vmem>>, vector<1x128xf32>
    %26 = vector.broadcast %25 : vector<1x128xf32> to vector<4x128xf32>
    %27 = arith.addf %24, %26 : vector<4x128xf32>
    %c0_22 = arith.constant 0 : index
    %c0_23 = arith.constant 0 : index
    %28 = vector.load %arg10[%c0_22, %c0_23] : memref<4x128xf32, #tpu.memory_space<vmem>>, vector<4x128xf32>
    tpu.vector_store %arg10[%c0_22, %c0_23], %27 {strides = array<i32>} : memref<4x128xf32, #tpu.memory_space<vmem>>, vector<4x128xf32>,
    return
  }
  func.func @transform_0(%arg0: i32) -> (i32, i32) {
    %c0_i32 = arith.constant 0 : i32
    %c0_i32_0 = arith.constant 0 : i32
    return %arg0, %c0_i32 : i32, i32
  }
  func.func @transform_1(%arg0: i32) -> (i32, i32) {
    %c0_i32 = arith.constant 0 : i32
    %c0_i32_0 = arith.constant 0 : i32
    return %arg0, %c0_i32 : i32, i32
  }
  func.func @transform_2(%arg0: i32) -> (i32, i32) {
    %c0_i32 = arith.constant 0 : i32
    %c0_i32_0 = arith.constant 0 : i32
    %c0_i32_1 = arith.constant 0 : i32
    return %c0_i32, %c0_i32_0 : i32, i32
  }
  func.func @transform_3(%arg0: i32) -> (i32, i32) {
    %c0_i32 = arith.constant 0 : i32
    %c0_i32_0 = arith.constant 0 : i32
    %c0_i32_1 = arith.constant 0 : i32
    return %c0_i32, %c0_i32_0 : i32, i32
  }
  func.func @transform_4(%arg0: i32) -> (i32, i32) {
    %c0_i32 = arith.constant 0 : i32
    %c0_i32_0 = arith.constant 0 : i32
    %c0_i32_1 = arith.constant 0 : i32
    return %c0_i32, %c0_i32_0 : i32, i32
  }
  func.func @transform_5(%arg0: i32) -> (i32, i32) {
    %c0_i32 = arith.constant 0 : i32
    %c0_i32_0 = arith.constant 0 : i32
    %c0_i32_1 = arith.constant 0 : i32
    return %c0_i32, %c0_i32_0 : i32, i32
  }
  func.func @transform_6(%arg0: i32) -> (i32, i32) {
    %c0_i32 = arith.constant 0 : i32
    %c0_i32_0 = arith.constant 0 : i32
    %c0_i32_1 = arith.constant 0 : i32
    return %c0_i32, %c0_i32_0 : i32, i32
  }
  func.func @transform_7(%arg0: i32) -> (i32, i32) {
    %c0_i32 = arith.constant 0 : i32
    %c0_i32_0 = arith.constant 0 : i32
    %c0_i32_1 = arith.constant 0 : i32
    return %c0_i32, %c0_i32_0 : i32, i32
  }
  func.func @transform_8(%arg0: i32) -> (i32, i32) {
    %c0_i32 = arith.constant 0 : i32
    %c0_i32_0 = arith.constant 0 : i32
    %c0_i32_1 = arith.constant 0 : i32
    return %c0_i32, %c0_i32_0 : i32, i32
  }
  func.func @transform_9(%arg0: i32) -> (i32, i32) {
    %c0_i32 = arith.constant 0 : i32
    %c0_i32_0 = arith.constant 0 : i32
    return %arg0, %c0_i32 : i32, i32
  }
}

</mosaic_0001>

<bundles_post_ra>
// kernel: tpu_custom_call.1
= control target key start
LH: loop header
LB: loop body
LE: loop exit
PB: predicated region body
PF: predicated region fallthrough
CT: control target
= control target key end

     0   :  { %vm178_vm0 = vcmask 1040384   ;;  %v2482_v2 = vmov 0   ;;  %vm174_vm1 = vcmask 138240   ;;  %vm749_vm2 = vcmask 1043456   ;;  %s3208_s0 = inlined_call_operand.vmem [shape: f32[4,376], index: 0, kind: input, shape index: {}]   ;;  %s3209_s1 = inlined_call_operand.vmem [shape: f32[4,17], index: 1, kind: input, shape index: {}]   ;;  %s3210_s2 = inlined_call_operand.vmem [shape: bf16[376,400], index: 2, kind: input, shape index: {}]   ;;  %s3211_s3 = inlined_call_operand.vmem [shape: bf16[17,400], index: 3, kind: input, shape index: {}]   ;;  %s3212_s4 = inlined_call_operand.vmem [shape: f32[1,400], index: 4, kind: input, shape index: {}]   ;;  %s3213_s5 = inlined_call_operand.vmem [shape: bf16[400,300], index: 5, kind: input, shape index: {}]   ;;  %s3214_s6 = inlined_call_operand.vmem [shape: f32[1,300], index: 6, kind: input, shape index: {}]   ;;  %s3215_s7 = inlined_call_operand.vmem [shape: bf16[300,128], index: 7, kind: input, shape index: {}]   ;;  %s3216_s8 = inlined_call_operand.vmem [shape: f32[1,128], index: 8, kind: input, shape index: {}]   ;;  %s3217_s9 = inlined_call_operand.hbm [shape: f32[4,128], index: 9, kind: output, shape index: {}]  }
   0x1   :  { %v2186_v0 = vld [vmem:[%s3211_s3 + $0x4] ss:$16 sps:$4 sm:$0xff]   ;;  %v180_v3 = vsel %vm178_vm0, 65535, %v2482_v2  ;;  %225 = vmatprep.mubr.bf16.mxu1 %v2482_v2  ;;  %v2190_v4 = vld [vmem:[%s3211_s3] ss:$16 sps:$4 sm:$0xff]   ;;  %vm745_vm3 = vcmask 982016  }
   0x2   :  { %v2188_v1 = vld [vmem:[%s3210_s2 + $0x4] ss:$16 sps:$4 sm:$0xff]   ;;  %193 = vmatprep.subr.bf16.mxu1 %v2186_v0  ;;  %v2191_v5 = vld [vmem:[%s3210_s2] ss:$16 sps:$4 sm:$0xff]   ;;  %v2199_v14 = vld [vmem:[%s3211_s3 + $0xc] ss:$16 sps:$4 sm:$0xff]  }
   0x3   :  { %v142_v6 = vld [vmem:[%s3211_s3 + $0x20] sm:$0x11]  ;;  %762 = vmatprep.subr.bf16.mxu0 %v2188_v1  ;;  %194 = vmatpush1.bf16.msra.mxu1 %v2190_v4  ;;  %v143_v17 = vld [vmem:[%s3211_s3 + $0x28] sm:$0x11] }
   0x4   :  { %v1915_v7 = vcombine.high %v142_v6, %v142_v6  ;;  %v2193_v8 = vld [vmem:[%s3210_s2 + $0x24] ss:$16 sps:$4 sm:$0xff]   ;;  %v1914_v9 = vcombine.low %v142_v6, %v142_v6  ;;  %763 = vmatpush1.bf16.msra.mxu0 %v2191_v5  ;;  %v2196_v10 = vld [vmem:[%s3210_s2 + $0x20] ss:$16 sps:$4 sm:$0xff]   ;;  %v2197_v18 = vld [vmem:[%s3211_s3 + $0x8] ss:$16 sps:$4 sm:$0xff]   ;;  %v1916_v20 = vcombine.low %v143_v17, %v143_v17  ;;  %v1917_v21 = vcombine.high %v143_v17, %v143_v17 }
   0x5   :  { %v136_v11 = vld [vmem:[%s3209_s1] sm:$0xf]  ;;  %764 = vmatprep.subr.bf16.mxu0 %v2193_v8  ;;  %v2200_v15 = vld [vmem:[%s3210_s2 + $0x44] ss:$16 sps:$4 sm:$0xff]   ;;  %v35_v62 = vld [vmem:[%s3208_s0 + $0x8] sm:$0xf] }
   0x6   :  { %v185_v12 = vand.u32 %v1915_v7, %v180_v3  ;;  %v182_v13 = vand.u32 %v1914_v9, %v180_v3  ;;  %v137_v16 = vpack.c.bf16 %v136_v11, %v136_v11  ;;  %v2202_v19 = vld [vmem:[%s3210_s2 + $0x40] ss:$16 sps:$4 sm:$0xff]   ;;  %v2205_v22 = vld [vmem:[%s3210_s2 + $0x64] ss:$16 sps:$4 sm:$0xff]   ;;  %v191_v23 = vand.u32 %v1917_v21, %v180_v3  ;;  %v2259_v1 = vld [vmem:[%s3210_s2 + $0xc] ss:$16 sps:$4 sm:$0xff]  }
   0x7   :  { %v188_v24 = vand.u32 %v1916_v20, %v180_v3  ;;  %v2207_v25 = vld [vmem:[%s3210_s2 + $0x60] ss:$16 sps:$4 sm:$0xff]   ;;  %v2208_v26 = vld [vmem:[%s3210_s2 + $0x84] ss:$16 sps:$4 sm:$0xff]   ;;  %v2694_v3 = vpack.c.bf16 %v35_v62, %v35_v62  ;;  %v2257_v4 = vld [vmem:[%s3210_s2 + $0x8] ss:$16 sps:$4 sm:$0xff]  }
   0x8   :  { %195 = vmatprep.subr.bf16.mxu1 %v185_v12  ;;  %765 = vmatpush1.bf16.msra.mxu0 %v2196_v10  ;;  %v2212_v27 = vld [vmem:[%s3210_s2 + $0x204] ss:$16 sps:$4 sm:$0xff]   ;;  %v2210_v28 = vld [vmem:[%s3210_s2 + $0x200] ss:$16 sps:$4 sm:$0xff]   ;;  %v2265_v7 = vld [vmem:[%s3210_s2 + $0x2c] ss:$16 sps:$4 sm:$0xff]  }
   0x9   :  { %196 = vmatpush1.bf16.msra.mxu1 %v182_v13  ;;  %766 = vmatprep.subr.bf16.mxu0 %v2200_v15  ;;  %v2213_v29 = vld [vmem:[%s3210_s2 + $0x80] ss:$16 sps:$4 sm:$0xff]   ;;  %v2214_v30 = vld [vmem:[%s3210_s2 + $0xa4] ss:$16 sps:$4 sm:$0xff]   ;;  %v2263_v8 = vld [vmem:[%s3210_s2 + $0x28] ss:$16 sps:$4 sm:$0xff]  }
   0xa   :  { %234 = vmatprep.subr.bf16.mxu1 %v2199_v14  ;;  %v2218_v31 = vld [vmem:[%s3210_s2 + $0x224] ss:$16 sps:$4 sm:$0xff]   ;;  %v2216_v32 = vld [vmem:[%s3210_s2 + $0x220] ss:$16 sps:$4 sm:$0xff]   ;;  %v2271_v11 = vld [vmem:[%s3210_s2 + $0x4c] ss:$16 sps:$4 sm:$0xff]  }
   0xb   :  { %v2219_v33 = vld [vmem:[%s3210_s2 + $0xa0] ss:$16 sps:$4 sm:$0xff]   ;;  %v2220_v34 = vld [vmem:[%s3210_s2 + $0xc4] ss:$16 sps:$4 sm:$0xff]   ;;  %v2269_v12 = vld [vmem:[%s3210_s2 + $0x48] ss:$16 sps:$4 sm:$0xff]  }
   0xc   :  { %1918 = vmatmul.mubr.msk.bf16.vlgmr.msra.gmra.mrb[0].mxu1 %vm174_vm1, %v137_v16  ;;  %767 = vmatpush1.bf16.msra.mxu0 %v2202_v19  ;;  %v2224_v35 = vld [vmem:[%s3210_s2 + $0x244] ss:$16 sps:$4 sm:$0xff]   ;;  %v2222_v36 = vld [vmem:[%s3210_s2 + $0x240] ss:$16 sps:$4 sm:$0xff]   ;;  %v2277_v15 = vld [vmem:[%s3210_s2 + $0x6c] ss:$16 sps:$4 sm:$0xff]  }
   0xd   :  { %235 = vmatpush1.bf16.msra.mxu1 %v2197_v18  ;;  %768 = vmatprep.subr.bf16.mxu0 %v2205_v22  ;;  %v2225_v37 = vld [vmem:[%s3210_s2 + $0xc0] ss:$16 sps:$4 sm:$0xff]   ;;  %v2226_v38 = vld [vmem:[%s3210_s2 + $0xe4] ss:$16 sps:$4 sm:$0xff]   ;;  %v2282_v18 = vld [vmem:[%s3210_s2 + $0x8c] ss:$16 sps:$4 sm:$0xff]  }
   0xe   :  { %236 = vmatprep.subr.bf16.mxu1 %v191_v23  ;;  %266 = vmatprep.mubr.bf16.mxu1 %v2482_v2  ;;  %v2230_v39 = vld [vmem:[%s3210_s2 + $0x264] ss:$16 sps:$4 sm:$0xff]   ;;  %v2228_v40 = vld [vmem:[%s3210_s2 + $0x260] ss:$16 sps:$4 sm:$0xff]   ;;  %v2294_v19 = vld [vmem:[%s3210_s2 + $0x20c] ss:$16 sps:$4 sm:$0xff]  }
   0xf   :  { %v2231_v41 = vld [vmem:[%s3210_s2 + $0xe0] ss:$16 sps:$4 sm:$0xff]   ;;  %v2232_v42 = vld [vmem:[%s3210_s2 + $0x104] ss:$16 sps:$4 sm:$0xff]   ;;  %v2280_v21 = vld [vmem:[%s3210_s2 + $0x88] ss:$16 sps:$4 sm:$0xff]  }
  0x10   :  { %769 = vmatpush1.bf16.msra.mxu0 %v2207_v25  ;;  %v2236_v43 = vld [vmem:[%s3210_s2 + $0x284] ss:$16 sps:$4 sm:$0xff]   ;;  %v2234_v44 = vld [vmem:[%s3210_s2 + $0x280] ss:$16 sps:$4 sm:$0xff]   ;;  %v2285_v22 = vld [vmem:[%s3210_s2 + $0xac] ss:$16 sps:$4 sm:$0xff]  }
  0x11   :  { %237 = vmatpush1.bf16.msra.mxu1 %v188_v24  ;;  %770 = vmatprep.subr.bf16.mxu0 %v2208_v26  ;;  %v2237_v45 = vld [vmem:[%s3210_s2 + $0x100] ss:$16 sps:$4 sm:$0xff]   ;;  %v2238_v46 = vld [vmem:[%s3210_s2 + $0x124] ss:$16 sps:$4 sm:$0xff]   ;;  %v2292_v23 = vld [vmem:[%s3210_s2 + $0x208] ss:$16 sps:$4 sm:$0xff]  }
  0x12   :  { %803 = vmatprep.subr.bf16.mxu1 %v2212_v27  ;;  %v2242_v47 = vld [vmem:[%s3210_s2 + $0x2a4] ss:$16 sps:$4 sm:$0xff]   ;;  %v2240_v48 = vld [vmem:[%s3210_s2 + $0x2a0] ss:$16 sps:$4 sm:$0xff]   ;;  %v2300_v24 = vld [vmem:[%s3210_s2 + $0x22c] ss:$16 sps:$4 sm:$0xff]  }
  0x13   :  { %v2243_v49 = vld [vmem:[%s3210_s2 + $0x120] ss:$16 sps:$4 sm:$0xff]   ;;  %v2244_v50 = vld [vmem:[%s3210_s2 + $0x144] ss:$16 sps:$4 sm:$0xff]   ;;  %v2283_v25 = vld [vmem:[%s3210_s2 + $0xa8] ss:$16 sps:$4 sm:$0xff]  }
  0x14   :  { %1919 = vmatmul.mubr.msk.bf16.vlgmr.msra.gmra.mrb[4].mxu1 %vm174_vm1, %v137_v16  ;;  %771 = vmatpush1.bf16.msra.mxu0 %v2213_v29  ;;  %v2248_v51 = vld [vmem:[%s3210_s2 + $0x2c4] ss:$16 sps:$4 sm:$0xff]   ;;  %v2246_v53 = vld [vmem:[%s3210_s2 + $0x2c0] ss:$16 sps:$4 sm:$0xff]   ;;  %v2275_v16 = vld [vmem:[%s3210_s2 + $0x68] ss:$16 sps:$4 sm:$0xff]  }
  0x15   :  { %804 = vmatpush1.bf16.msra.mxu1 %v2210_v28  ;;  %772 = vmatprep.subr.bf16.mxu0 %v2214_v30  ;;  %v134_v52 = vld [vmem:[%s3210_s2 + $0x2e0] sm:$0xff]  ;;  %v2298_v26 = vld [vmem:[%s3210_s2 + $0x228] ss:$16 sps:$4 sm:$0xff]   ;;  %v2288_v27 = vld [vmem:[%s3210_s2 + $0xcc] ss:$16 sps:$4 sm:$0xff]  }
  0x16   :  { %805 = vmatprep.subr.bf16.mxu1 %v2218_v31  ;;  %835 = vmatprep.mubr.bf16.mxu1 %v2482_v2  ;;  %v2249_v54 = vld [vmem:[%s3210_s2 + $0x140] ss:$16 sps:$4 sm:$0xff]   ;;  %v2250_v56 = vld [vmem:[%s3210_s2 + $0x164] ss:$16 sps:$4 sm:$0xff]   ;;  %v2013_v57 = vcombine.high %v134_v52, %v134_v52  ;;  %v2012_v58 = vcombine.low %v134_v52, %v134_v52  ;;  %v2306_v28 = vld [vmem:[%s3210_s2 + $0x24c] ss:$16 sps:$4 sm:$0xff]  }
  0x17   :  { %v34_v55 = vld [vmem:[%s3208_s0] sm:$0xff]  ;;  %v2286_v29 = vld [vmem:[%s3210_s2 + $0xc8] ss:$16 sps:$4 sm:$0xff]   ;;  %v2291_v31 = vld [vmem:[%s3210_s2 + $0xec] ss:$16 sps:$4 sm:$0xff]  }
  0x18   :  { %773 = vmatpush1.bf16.msra.mxu0 %v2219_v33  ;;  %v37_v59 = vcombine.high %v34_v55, %v34_v55  ;;  %v2253_v61 = vld [vmem:[%s3210_s2 + $0x160] ss:$16 sps:$4 sm:$0xff]   ;;  %v751_v63 = vsel %vm749_vm2, %v2012_v58, 0  ;;  %v2255_v0 = vld [vmem:[%s3210_s2 + $0x184] ss:$16 sps:$4 sm:$0xff]   ;;  %v2746_v20 = vpack.c.bf16 %v34_v55, %v34_v55 }
  0x19   :  { %806 = vmatpush1.bf16.msra.mxu1 %v2216_v32  ;;  %774 = vmatprep.subr.bf16.mxu0 %v2220_v34  ;;  %v2260_v5 = vld [vmem:[%s3210_s2 + $0x180] ss:$16 sps:$4 sm:$0xff]   ;;  %v2261_v6 = vld [vmem:[%s3210_s2 + $0x1a4] ss:$16 sps:$4 sm:$0xff]   ;;  %v2304_v30 = vld [vmem:[%s3210_s2 + $0x248] ss:$16 sps:$4 sm:$0xff]  }
  0x1a   :  { %807 = vmatprep.subr.bf16.mxu1 %v2224_v35  ;;  %v40_v60 = vpack.c.bf16 %v37_v59, %v37_v59  ;;  %v2266_v9 = vld [vmem:[%s3210_s2 + $0x1a0] ss:$16 sps:$4 sm:$0xff]   ;;  %v2267_v10 = vld [vmem:[%s3210_s2 + $0x1c4] ss:$16 sps:$4 sm:$0xff]   ;;  %v2312_v32 = vld [vmem:[%s3210_s2 + $0x26c] ss:$16 sps:$4 sm:$0xff]  }
  0x1b   :  { %v2272_v13 = vld [vmem:[%s3210_s2 + $0x1c0] ss:$16 sps:$4 sm:$0xff]   ;;  %v2273_v14 = vld [vmem:[%s3210_s2 + $0x1e4] ss:$16 sps:$4 sm:$0xff]   ;;  %v2289_v33 = vld [vmem:[%s3210_s2 + $0xe8] ss:$16 sps:$4 sm:$0xff]  }
  0x1c   :  { %775 = vmatpush1.bf16.msra.mxu0 %v2225_v37  ;;  %794 = vmatprep.mubr.bf16.mxu0 %v40_v60  ;;  %v2278_v17 = vld [vmem:[%s3210_s2 + $0x1e0] ss:$16 sps:$4 sm:$0xff]   ;;  %v2310_v34 = vld [vmem:[%s3210_s2 + $0x268] ss:$16 sps:$4 sm:$0xff]   ;;  %v2297_v35 = vld [vmem:[%s3210_s2 + $0x10c] ss:$16 sps:$4 sm:$0xff]  }
  0x1d   :  { %808 = vmatpush1.bf16.msra.mxu1 %v2222_v36  ;;  %776 = vmatprep.subr.bf16.mxu0 %v2226_v38  ;;  %v2318_v36 = vld [vmem:[%s3210_s2 + $0x28c] ss:$16 sps:$4 sm:$0xff]   ;;  %v2295_v37 = vld [vmem:[%s3210_s2 + $0x108] ss:$16 sps:$4 sm:$0xff]  }
  0x1e   :  { %809 = vmatprep.subr.bf16.mxu1 %v2230_v39  ;;  %v2316_v38 = vld [vmem:[%s3210_s2 + $0x288] ss:$16 sps:$4 sm:$0xff]   ;;  %v2303_v39 = vld [vmem:[%s3210_s2 + $0x12c] ss:$16 sps:$4 sm:$0xff]  }
  0x1f   :  { %v2321_v52 = vld [vmem:[%s3210_s2 + $0x18c] ss:$16 sps:$4 sm:$0xff]   ;;  %v2325_v58 = vld [vmem:[%s3210_s2 + $0x1a8] ss:$16 sps:$4 sm:$0xff]  }
  0x20   :  { %777 = vmatpush1.bf16.msra.mxu0 %v2231_v41  ;;  %v2301_v41 = vld [vmem:[%s3210_s2 + $0x128] ss:$16 sps:$4 sm:$0xff]   ;;  %v2327_v55 = vld [vmem:[%s3210_s2 + $0x1ac] ss:$16 sps:$4 sm:$0xff]  }
  0x21   :  { %810 = vmatpush1.bf16.msra.mxu1 %v2228_v40  ;;  %778 = vmatprep.subr.bf16.mxu0 %v2232_v42  ;;  %v2324_v40 = vld [vmem:[%s3210_s2 + $0x2ac] ss:$16 sps:$4 sm:$0xff]   ;;  %v2322_v42 = vld [vmem:[%s3210_s2 + $0x2a8] ss:$16 sps:$4 sm:$0xff]  }
  0x22   :  { %811 = vmatprep.subr.bf16.mxu1 %v2236_v43  ;;  %v2309_v43 = vld [vmem:[%s3210_s2 + $0x14c] ss:$16 sps:$4 sm:$0xff]   ;;  %v2342_v62 = vld [vmem:[%s3213_s5 + $0x18] ss:$12 sps:$4 sm:$0xff]  }
  0x23   :  { %v2333_v59 = vld [vmem:[%s3210_s2 + $0x1cc] ss:$16 sps:$4 sm:$0xff]  }
  0x24   :  { %779 = vmatpush1.bf16.msra.mxu0 %v2237_v45  ;;  %v135_v45 = vld [vmem:[%s3210_s2 + $0x2e8] sm:$0xff] }
  0x25   :  { %812 = vmatpush1.bf16.msra.mxu1 %v2234_v44  ;;  %780 = vmatprep.subr.bf16.mxu0 %v2238_v46  ;;  %v2330_v44 = vld [vmem:[%s3210_s2 + $0x2cc] ss:$16 sps:$4 sm:$0xff]   ;;  %v2307_v46 = vld [vmem:[%s3210_s2 + $0x148] ss:$16 sps:$4 sm:$0xff]  }
  0x26   :  { %813 = vmatprep.subr.bf16.mxu1 %v2242_v47  ;;  %v2328_v47 = vld [vmem:[%s3210_s2 + $0x2c8] ss:$16 sps:$4 sm:$0xff]  }
  0x28   :  { %781 = vmatpush1.bf16.msra.mxu0 %v2243_v49  ;;  %v2015_v49 = vcombine.high %v135_v45, %v135_v45 }
  0x29   :  { %814 = vmatpush1.bf16.msra.mxu1 %v2240_v48  ;;  %782 = vmatprep.subr.bf16.mxu0 %v2244_v50  ;;  %v2315_v48 = vld [vmem:[%s3210_s2 + $0x16c] ss:$16 sps:$4 sm:$0xff]   ;;  %v2014_v50 = vcombine.low %v135_v45, %v135_v45 }
  0x2a   :  { %815 = vmatprep.subr.bf16.mxu1 %v2248_v51  ;;  %v2313_v51 = vld [vmem:[%s3210_s2 + $0x168] ss:$16 sps:$4 sm:$0xff]  }
  0x2c   :  { %783 = vmatpush1.bf16.msra.mxu0 %v2249_v54  ;;  %v2319_v54 = vld [vmem:[%s3210_s2 + $0x188] ss:$16 sps:$4 sm:$0xff]  }
  0x2d   :  { %816 = vmatpush1.bf16.msra.mxu1 %v2246_v53  ;;  %784 = vmatprep.subr.bf16.mxu0 %v2250_v56  ;;  %v757_v53 = vsel %vm749_vm2, %v2014_v50, 0  ;;  %v2339_v56 = vld [vmem:[%s3213_s5] ss:$12 sps:$4 sm:$0xff]  }
  0x2e   :  { %2016 = vmatprep.subr.msk.bf16.mxu1 %vm749_vm2, %v2013_v57  ;;  %v2341_v57 = vld [vmem:[%s3213_s5 + $0x4] ss:$12 sps:$4 sm:$0xff]  }
  0x30   :  { %785 = vmatpush1.bf16.msra.mxu0 %v2253_v61  ;;  %v2331_v61 = vld [vmem:[%s3210_s2 + $0x1c8] ss:$16 sps:$4 sm:$0xff]  }
  0x31   :  { %818 = vmatpush1.bf16.msra.mxu1 %v751_v63  ;;  %786 = vmatprep.subr.bf16.mxu0 %v2255_v0  ;;  %v2337_v63 = vld [vmem:[%s3210_s2 + $0x1ec] ss:$16 sps:$4 sm:$0xff]  }
  0x32   :  { %844 = vmatprep.subr.bf16.mxu1 %v2259_v1  ;;  %v2345_v0 = vld [vmem:[%s3213_s5 + $0x30] ss:$12 sps:$4 sm:$0xff]   ;;  %v2347_v1 = vld [vmem:[%s3213_s5 + $0x34] ss:$12 sps:$4 sm:$0xff]  }
  0x34   :  { %2017 = vmatmul.mubr.msk.bf16.vlgmr.msra.gmra.mrb[8].mxu1 %vm745_vm3, %v2694_v3  ;;  %787 = vmatpush1.bf16.msra.mxu0 %v2260_v5  ;;  %v2348_v5 = vld [vmem:[%s3213_s5 + $0x48] ss:$12 sps:$4 sm:$0xff]  }
  0x35   :  { %845 = vmatpush1.bf16.msra.mxu1 %v2257_v4  ;;  %788 = vmatprep.subr.bf16.mxu0 %v2261_v6  ;;  %v2335_v4 = vld [vmem:[%s3210_s2 + $0x1e8] ss:$16 sps:$4 sm:$0xff]   ;;  %v2353_v6 = vld [vmem:[%s3213_s5 + $0x64] ss:$12 sps:$4 sm:$0xff]  }
  0x36   :  { %846 = vmatprep.subr.bf16.mxu1 %v2265_v7  ;;  %876 = vmatprep.mubr.bf16.mxu1 %v40_v60  ;;  %v2344_v60 = vld [vmem:[%s3213_s5 + $0x1c] ss:$12 sps:$4 sm:$0xff]  }
  0x37   :  { %v2366_v7 = vld [vmem:[%s3213_s5 + $0xc8] ss:$12 sps:$4 sm:$0xff]  }
  0x38   :  { %789 = vmatpush1.bf16.msra.mxu0 %v2266_v9  ;;  %v2367_v9 = vld [vmem:[%s3213_s5 + $0x8] ss:$12 sps:$4 sm:$0xff]  }
  0x39   :  { %847 = vmatpush1.bf16.msra.mxu1 %v2263_v8  ;;  %790 = vmatprep.subr.bf16.mxu0 %v2267_v10  ;;  %v2351_v8 = vld [vmem:[%s3213_s5 + $0x60] ss:$12 sps:$4 sm:$0xff]   ;;  %v2356_v10 = vld [vmem:[%s3213_s5 + $0x7c] ss:$12 sps:$4 sm:$0xff]  }
  0x3a   :  { %848 = vmatprep.subr.bf16.mxu1 %v2271_v11  ;;  %v2354_v11 = vld [vmem:[%s3213_s5 + $0x78] ss:$12 sps:$4 sm:$0xff]  }
  0x3c   :  { %791 = vmatpush1.bf16.msra.mxu0 %v2272_v13 }
  0x3d   :  { %849 = vmatpush1.bf16.msra.mxu1 %v2269_v12  ;;  %792 = vmatprep.subr.bf16.mxu0 %v2273_v14  ;;  %v2359_v12 = vld [vmem:[%s3213_s5 + $0x94] ss:$12 sps:$4 sm:$0xff]  }
  0x3e   :  { %850 = vmatprep.subr.bf16.mxu1 %v2277_v15 }
  0x40   :  { %793 = vmatpush1.bf16.msra.mxu0 %v2278_v17 }
  0x41   :  { %851 = vmatpush1.bf16.msra.mxu1 %v2275_v16  ;;  %885 = vmatprep.subr.bf16.mxu0 %v2294_v19 }
  0x42   :  { %852 = vmatprep.subr.bf16.mxu1 %v2282_v18 }
  0x43   :  { %795 = vmatmul.mubr.bf16.vlgmr.msra.gmra.mrb[0].mxu0 %v2746_v20 }
  0x44   :  { %886 = vmatpush1.bf16.msra.mxu0 %v2292_v23  ;;  %917 = vmatprep.mubr.bf16.mxu0 %v2482_v2 }
  0x45   :  { %853 = vmatpush1.bf16.msra.mxu1 %v2280_v21  ;;  %887 = vmatprep.subr.bf16.mxu0 %v2300_v24 }
  0x46   :  { %854 = vmatprep.subr.bf16.mxu1 %v2285_v22 }
  0x48   :  { %888 = vmatpush1.bf16.msra.mxu0 %v2298_v26 }
  0x49   :  { %855 = vmatpush1.bf16.msra.mxu1 %v2283_v25  ;;  %889 = vmatprep.subr.bf16.mxu0 %v2306_v28 }
  0x4a   :  { %856 = vmatprep.subr.bf16.mxu1 %v2288_v27 }
  0x4c   :  { %890 = vmatpush1.bf16.msra.mxu0 %v2304_v30 }
  0x4d   :  { %857 = vmatpush1.bf16.msra.mxu1 %v2286_v29  ;;  %891 = vmatprep.subr.bf16.mxu0 %v2312_v32 }
  0x4e   :  { %858 = vmatprep.subr.bf16.mxu1 %v2291_v31 }
  0x50   :  { %892 = vmatpush1.bf16.msra.mxu0 %v2310_v34 }
  0x51   :  { %859 = vmatpush1.bf16.msra.mxu1 %v2289_v33  ;;  %893 = vmatprep.subr.bf16.mxu0 %v2318_v36 }
  0x52   :  { %860 = vmatprep.subr.bf16.mxu1 %v2297_v35 }
  0x54   :  { %894 = vmatpush1.bf16.msra.mxu0 %v2316_v38 }
  0x55   :  { %861 = vmatpush1.bf16.msra.mxu1 %v2295_v37  ;;  %895 = vmatprep.subr.bf16.mxu0 %v2324_v40 }
  0x56   :  { %862 = vmatprep.subr.bf16.mxu1 %v2303_v39 }
  0x58   :  { %896 = vmatpush1.bf16.msra.mxu0 %v2322_v42 }
  0x59   :  { %863 = vmatpush1.bf16.msra.mxu1 %v2301_v41  ;;  %897 = vmatprep.subr.bf16.mxu0 %v2330_v44 }
  0x5a   :  { %864 = vmatprep.subr.bf16.mxu1 %v2309_v43 }
  0x5c   :  { %898 = vmatpush1.bf16.msra.mxu0 %v2328_v47 }
  0x5d   :  { %865 = vmatpush1.bf16.msra.mxu1 %v2307_v46  ;;  %2018 = vmatprep.subr.msk.bf16.mxu0 %vm749_vm2, %v2015_v49 }
  0x5e   :  { %866 = vmatprep.subr.bf16.mxu1 %v2315_v48 }
  0x60   :  { %900 = vmatpush1.bf16.msra.mxu0 %v757_v53 }
  0x61   :  { %867 = vmatpush1.bf16.msra.mxu1 %v2313_v51  ;;  %1481 = vmatprep.subr.bf16.mxu0 %v2341_v57 }
  0x62   :  { %868 = vmatprep.subr.bf16.mxu1 %v2321_v52 }
  0x63   :  { %2019 = vmatmul.mubr.msk.bf16.vlgmr.msra.gmra.mrb[4].mxu0 %vm745_vm3, %v2694_v3  ;;  %v2350_v3 = vld [vmem:[%s3213_s5 + $0x4c] ss:$12 sps:$4 sm:$0xff]  }
  0x64   :  { %1482 = vmatpush1.bf16.msra.mxu0 %v2339_v56 }
  0x65   :  { %869 = vmatpush1.bf16.msra.mxu1 %v2319_v54  ;;  %1483 = vmatprep.subr.bf16.mxu0 %v2344_v60 }
  0x66   :  { %870 = vmatprep.subr.bf16.mxu1 %v2327_v55 }
  0x68   :  { %1484 = vmatpush1.bf16.msra.mxu0 %v2342_v62 }
  0x69   :  { %871 = vmatpush1.bf16.msra.mxu1 %v2325_v58  ;;  %1485 = vmatprep.subr.bf16.mxu0 %v2347_v1 }
  0x6a   :  { %872 = vmatprep.subr.bf16.mxu1 %v2333_v59 }
  0x6c   :  { %1486 = vmatpush1.bf16.msra.mxu0 %v2345_v0 }
  0x6d   :  { %873 = vmatpush1.bf16.msra.mxu1 %v2331_v61  ;;  %1487 = vmatprep.subr.bf16.mxu0 %v2350_v3 }
  0x6e   :  { %874 = vmatprep.subr.bf16.mxu1 %v2337_v63 }
  0x70   :  { %1488 = vmatpush1.bf16.msra.mxu0 %v2348_v5 }
  0x71   :  { %875 = vmatpush1.bf16.msra.mxu1 %v2335_v4  ;;  %1489 = vmatprep.subr.bf16.mxu0 %v2353_v6 }
  0x72   :  { %2118 = vmatprep.subr.bf16.mxu1 %v2366_v7 }
  0x74   :  { %877 = vmatmul.mubr.bf16.vlgmr.msra.gmra.mrb[12].mxu1 %v2746_v20  ;;  %1490 = vmatpush1.bf16.msra.mxu0 %v2351_v8 }
  0x75   :  { %2119 = vmatpush3.bf16.msra.mxu1 %v2367_v9  ;;  %1491 = vmatprep.subr.bf16.mxu0 %v2356_v10 }
  0x76   :  { %14 = vsyncpa [#allocation3], 0  ;;  %v2357_v13 = vld [vmem:[%s3213_s5 + $0x90] ss:$12 sps:$4 sm:$0xff]   ;;  %v2362_v14 = vld [vmem:[%s3213_s5 + $0xac] ss:$12 sps:$4 sm:$0xff]   ;;  %v928_v59 = vlaneseq }
  0x77   :  { %v2360_v15 = vld [vmem:[%s3213_s5 + $0xa8] ss:$12 sps:$4 sm:$0xff]   ;;  %v2365_v16 = vld [vmem:[%s3213_s5 + $0xc4] ss:$12 sps:$4 sm:$0xff]   ;;  %v2363_v17 = vld [vmem:[%s3213_s5 + $0xc0] ss:$12 sps:$4 sm:$0xff]  }
  0x78   :  { %1492 = vmatpush1.bf16.msra.mxu0 %v2354_v11  ;;  %v2370_v18 = vld [vmem:[%s3213_s5 + $0xdc] ss:$12 sps:$4 sm:$0xff]   ;;  %v2371_v19 = vld [vmem:[%s3213_s5 + $0xe0] ss:$12 sps:$4 sm:$0xff]   ;;  %v2368_v20 = vld [vmem:[%s3213_s5 + $0xd8] ss:$12 sps:$4 sm:$0xff]  }
  0x79   :  { %1493 = vmatprep.subr.bf16.mxu0 %v2359_v12  ;;  %v2372_v21 = vld [vmem:[%s3213_s5 + $0x20] ss:$12 sps:$4 sm:$0xff]   ;;  %2120 = vmatprep.subr.bf16.mxu1 %v2371_v19  ;;  %v2373_v22 = vld [vmem:[%s3213_s5 + $0xf0] ss:$12 sps:$4 sm:$0xff]   ;;  %v2376_v24 = vld [vmem:[%s3213_s5 + $0xf8] ss:$12 sps:$4 sm:$0xff]  }
  0x7a   :  { %2121 = vmatpush3.bf16.msra.mxu1 %v2372_v21  ;;  %v2375_v23 = vld [vmem:[%s3213_s5 + $0xf4] ss:$12 sps:$4 sm:$0xff]   ;;  %v2377_v25 = vld [vmem:[%s3213_s5 + $0x38] ss:$12 sps:$4 sm:$0xff]   ;;  %v2381_v27 = vld [vmem:[%s3213_s5 + $0x110] ss:$12 sps:$4 sm:$0xff]  }
  0x7b   :  { %v2380_v26 = vld [vmem:[%s3213_s5 + $0x10c] ss:$12 sps:$4 sm:$0xff]   ;;  %2122 = vmatprep.subr.bf16.mxu1 %v2376_v24  ;;  %v2378_v28 = vld [vmem:[%s3213_s5 + $0x108] ss:$12 sps:$4 sm:$0xff]   ;;  %v2382_v29 = vld [vmem:[%s3213_s5 + $0x50] ss:$12 sps:$4 sm:$0xff]  }
  0x7c   :  { %1494 = vmatpush1.bf16.msra.mxu0 %v2357_v13  ;;  %v2385_v30 = vld [vmem:[%s3213_s5 + $0x124] ss:$12 sps:$4 sm:$0xff]   ;;  %v2386_v31 = vld [vmem:[%s3213_s5 + $0x128] ss:$12 sps:$4 sm:$0xff]   ;;  %v2383_v32 = vld [vmem:[%s3213_s5 + $0x120] ss:$12 sps:$4 sm:$0xff]  }
  0x7d   :  { %1495 = vmatprep.subr.bf16.mxu0 %v2362_v14  ;;  %v2387_v33 = vld [vmem:[%s3213_s5 + $0x68] ss:$12 sps:$4 sm:$0xff]   ;;  %v2391_v35 = vld [vmem:[%s3213_s5 + $0x140] ss:$12 sps:$4 sm:$0xff]   ;;  %v2388_v36 = vld [vmem:[%s3213_s5 + $0x138] ss:$12 sps:$4 sm:$0xff]  }
  0x7e   :  { %2123 = vmatpush3.bf16.msra.mxu1 %v2377_v25  ;;  %v2390_v34 = vld [vmem:[%s3213_s5 + $0x13c] ss:$12 sps:$4 sm:$0xff]   ;;  %v2392_v37 = vld [vmem:[%s3213_s5 + $0x80] ss:$12 sps:$4 sm:$0xff]   ;;  %v2396_v39 = vld [vmem:[%s3213_s5 + $0x158] ss:$12 sps:$4 sm:$0xff]  }
  0x7f   :  { %2124 = vmatprep.subr.bf16.mxu1 %v2381_v27  ;;  %v2395_v38 = vld [vmem:[%s3213_s5 + $0x154] ss:$12 sps:$4 sm:$0xff]   ;;  %v2393_v40 = vld [vmem:[%s3213_s5 + $0x150] ss:$12 sps:$4 sm:$0xff]   ;;  %v2397_v41 = vld [vmem:[%s3213_s5 + $0x98] ss:$12 sps:$4 sm:$0xff]  }
  0x80   :  { %1496 = vmatpush1.bf16.msra.mxu0 %v2360_v15  ;;  %v2400_v42 = vld [vmem:[%s3213_s5 + $0x16c] ss:$12 sps:$4 sm:$0xff]   ;;  %v2401_v43 = vld [vmem:[%s3213_s5 + $0x170] ss:$12 sps:$4 sm:$0xff]   ;;  %v2398_v44 = vld [vmem:[%s3213_s5 + $0x168] ss:$12 sps:$4 sm:$0xff]  }
  0x81   :  { %1497 = vmatprep.subr.bf16.mxu0 %v2365_v16  ;;  %v2402_v45 = vld [vmem:[%s3213_s5 + $0xb0] ss:$12 sps:$4 sm:$0xff]   ;;  %v3018_v60 = vshrl.u32 %v928_v59, 7  ;;  %v3024_v62 = vld [vmem:[%s3212_s4] sm:$0xf]  ;;  %vm1477_vm4 = vcmask 130048  }
  0x82   :  { %2125 = vmatpush3.bf16.msra.mxu1 %v2382_v29  ;;  %v2405_v46 = vld [vmem:[%s3213_s5 + $0x184] ss:$12 sps:$4 sm:$0xff]   ;;  %v2403_v16 = vld [vmem:[%s3213_s5 + $0x180] ss:$12 sps:$4 sm:$0xff]   ;;  %v2409_v19 = vld [vmem:[%s3213_s5 + $0x19c] ss:$12 sps:$4 sm:$0xff]  }
  0x83   :  { %2126 = vmatprep.subr.bf16.mxu1 %v2386_v31  ;;  %v930_v61 = vsub.s32 0, %v3018_v60  ;;  %v934_v63 = vsub.s32 1, %v3018_v60  ;;  %v2410_v21 = vld [vmem:[%s3213_s5 + $0x1a0] ss:$12 sps:$4 sm:$0xff]   ;;  %v2414_v24 = vld [vmem:[%s3213_s5 + $0x1b8] ss:$12 sps:$4 sm:$0xff]  }
  0x84   :  { %1498 = vmatpush1.bf16.msra.mxu0 %v2363_v17  ;;  %v2406_v17 = vld [vmem:[%s3213_s5 + $0x188] ss:$12 sps:$4 sm:$0xff]   ;;  %v2417_v25 = vld [vmem:[%s3213_s5 + $0x1cc] ss:$12 sps:$4 sm:$0xff]   ;;  %v2418_v27 = vld [vmem:[%s3213_s5 + $0x1d0] ss:$12 sps:$4 sm:$0xff]  }
  0x85   :  { %1499 = vmatprep.subr.bf16.mxu0 %v2370_v18  ;;  %v931_v3 = vrot.slane %v3024_v62, %v930_v61  ;;  %v935_v6 = vrot.slane %v3024_v62, %v934_v63  ;;  %v2419_v29 = vld [vmem:[%s3213_s5 + $0x1e0] ss:$12 sps:$4 sm:$0xff]   ;;  %v2425_v31 = vld [vmem:[%s3213_s5 + $0x1fc] ss:$12 sps:$4 sm:$0xff]   ;;  %vm1811_vm5 = vcmask 1045504   ;;  %vm2484_vm6 = vmmov 0  }
  0x86   :  { %2127 = vmatpush3.bf16.msra.mxu1 %v2387_v33  ;;  %v2426_v33 = vld [vmem:[%s3213_s5 + $0x200] ss:$12 sps:$4 sm:$0xff]   ;;  %vm1807_vm7 = vcmask 359424   ;;  %s2485_s15 = smov [#allocation2]  }
  0x87   :  { %2128 = vmatprep.subr.bf16.mxu1 %v2391_v35  ;;  %s1902_s3 = sshll.u32 %s2485_s15, 4  ;;  %s1903_s3 = int_to_ptr.vmem [resolvable:$true] %s1902_s3 }
  0x88   :  { %1500 = vmatpush1.bf16.msra.mxu0 %v2368_v20  ;;  %v2407_v20 = vld [vmem:[%s3213_s5 + $0x198] ss:$12 sps:$4 sm:$0xff]   ;;  %s2458_s16 = scalar_lea.vmem %s1903_s3, 64  ;;  %p2463_p1 = scmp.lt.s32.totalorder %s1903_s3, %s1903_s3 }
  0x89   :  { %1501 = vmatprep.subr.bf16.mxu0 %v2375_v23  ;;  %v2411_v23 = vld [vmem:[%s3213_s5 + $0x1b0] ss:$12 sps:$4 sm:$0xff]   ;;  %p2459_p0 = scmp.ne.s32.totalorder %s1903_s3, %s2458_s16  ;;  %p2464_p2 = scmp.lt.s32.totalorder %s2458_s16, %s2458_s16 }
  0x8a   :  { %2129 = vmatpush3.bf16.msra.mxu1 %v2392_v37 }
  0x8b   :  { %2130 = vmatprep.subr.bf16.mxu1 %v2396_v39  ;;  %v2430_v39 = vld [vmem:[%s3213_s5 + $0x218] ss:$12 sps:$4 sm:$0xff]   ;;  %p2465_p3 = por %p2464_p2, %p2463_p1 }
  0x8c   :  { %1502 = vmatpush1.bf16.msra.mxu0 %v2373_v22  ;;  %v2413_v22 = vld [vmem:[%s3213_s5 + $0x1b4] ss:$12 sps:$4 sm:$0xff]  }
  0x8d   :  { %1503 = vmatprep.subr.bf16.mxu0 %v2380_v26  ;;  %v2415_v26 = vld [vmem:[%s3213_s5 + $0x1c8] ss:$12 sps:$4 sm:$0xff]   ;;  %p2466_p4 = pnand %p2465_p3, %p2459_p0 }
  0x8e   :  { %2131 = vmatpush3.bf16.msra.mxu1 %v2397_v41  ;;  %v2433_v41 = vld [vmem:[%s3213_s5 + $0x22c] ss:$12 sps:$4 sm:$0xff]  }
  0x8f   :  { %2132 = vmatprep.subr.bf16.mxu1 %v2401_v43  ;;  %v2434_v43 = vld [vmem:[%s3213_s5 + $0x230] ss:$12 sps:$4 sm:$0xff]  }
  0x90   :  { %1504 = vmatpush1.bf16.msra.mxu0 %v2378_v28  ;;  %v2421_v28 = vld [vmem:[%s3213_s5 + $0x1e4] ss:$12 sps:$4 sm:$0xff]  }
  0x91   :  { %1505 = vmatprep.subr.bf16.mxu0 %v2385_v30  ;;  %v2422_v30 = vld [vmem:[%s3213_s5 + $0x1e8] ss:$12 sps:$4 sm:$0xff]  }
  0x92   :  { %2133 = vmatpush3.bf16.msra.mxu1 %v2402_v45  ;;  %v2435_v45 = vld [vmem:[%s3213_s5 + $0x240] ss:$12 sps:$4 sm:$0xff]  }
  0x93   :  { %1603 = vmatprep.subr.bf16.mxu1 %v2482_v2 }
  0x94   :  { %1506 = vmatpush1.bf16.msra.mxu0 %v2383_v32  ;;  %v2423_v32 = vld [vmem:[%s3213_s5 + $0x1f8] ss:$12 sps:$4 sm:$0xff]  }
  0x95   :  { %1507 = vmatprep.subr.bf16.mxu0 %v2390_v34  ;;  %v2429_v34 = vld [vmem:[%s3213_s5 + $0x214] ss:$12 sps:$4 sm:$0xff]  }
  0x98   :  { %1508 = vmatpush1.bf16.msra.mxu0 %v2388_v36 }
  0x99   :  { %1509 = vmatprep.subr.bf16.mxu0 %v2395_v38  ;;  %v2427_v38 = vld [vmem:[%s3213_s5 + $0x210] ss:$12 sps:$4 sm:$0xff]  }
  0x9c   :  { %1510 = vmatpush1.bf16.msra.mxu0 %v2393_v40 }
  0x9d   :  { %1511 = vmatprep.subr.bf16.mxu0 %v2400_v42  ;;  %v2431_v42 = vld [vmem:[%s3213_s5 + $0x228] ss:$12 sps:$4 sm:$0xff]  }
  0xa0   :  { %1512 = vmatpush1.bf16.msra.mxu0 %v2398_v44  ;;  %v2437_v44 = vld [vmem:[%s3213_s5 + $0x244] ss:$12 sps:$4 sm:$0xff]  }
  0xa1   :  { %1522 = vmatprep.subr.bf16.mxu0 %v2405_v46  ;;  %v2438_v46 = vld [vmem:[%s3213_s5 + $0x248] ss:$12 sps:$4 sm:$0xff]  }
  0xdf   :  { %v227_v47 = vpop.f32.mrb[0].mxu1 }
  0xe0   :  { %v229_v48 = vpop.f32.mrb[1].mxu1 }
  0xe1   :  { %v231_v49 = vpop.f32.mrb[2].mxu1 }
  0xe2   :  { %v232_v50 = vpop.f32.mrb[3].mxu1 }
  0xe7   :  { %v3014_v51 = vpop.f32.mrb[4].mxu1 }
  0xe8   :  { %v3016_v52 = vpop.f32.mrb[5].mxu1 }
  0xe9   :  { %v272_v53 = vpop.f32.mrb[6].mxu1 }
  0xea   :  { %v273_v54 = vpop.f32.mrb[7].mxu1 }
 0x107   :  { %v837_v55 = vpop.f32.mrb[8].mxu1 }
 0x108   :  { %v839_v56 = vpop.f32.mrb[9].mxu1 }
 0x109   :  { %v841_v57 = vpop.f32.mrb[10].mxu1 }
 0x10a   :  { %v842_v58 = vpop.f32.mrb[11].mxu1 }
 0x116   :  { %v796_v0 = vpop.f32.mrb[0].mxu0 }
 0x117   :  { %v797_v1 = vadd.f32 %v796_v0, %v227_v47  ;;  %v798_v4 = vpop.f32.mrb[1].mxu0  ;;  %v938_v47 = vsub.s32 2, %v3018_v60 }
 0x118   :  { %v799_v5 = vadd.f32 %v798_v4, %v229_v48  ;;  %v800_v7 = vpop.f32.mrb[2].mxu0  ;;  %v942_v48 = vsub.s32 3, %v3018_v60 }
 0x119   :  { %v838_v8 = vadd.f32 %v837_v55, %v797_v1  ;;  %v801_v9 = vpop.f32.mrb[3].mxu0  ;;  %v939_v53 = vrot.slane %v3024_v62, %v938_v47  ;;  %v2483_v7 = vmov 0.0  }
 0x11a   :  { %v840_v10 = vadd.f32 %v839_v56, %v799_v5  ;;  %v943_v56 = vrot.slane %v3024_v62, %v942_v48  ;;  %v2440_v62 = vld [vmem:[%s3215_s7] sm:$0xff]  }
 0x11b   :  { %v948_v11 = vadd.f32 %v931_v3, %v838_v8  ;;  %v2442_v8 = vld [vmem:[%s3215_s7 + $0x8] sm:$0xff]   ;;  %v2449_v9 = vld [vmem:[%s3215_s7 + $0x80] sm:$0xff]  }
 0x11c   :  { %v949_v12 = vadd.f32 %v935_v6, %v840_v10  ;;  %v2441_v6 = vld [vmem:[%s3215_s7 + $0x48] sm:$0xff]   ;;  %v2443_v10 = vld [vmem:[%s3215_s7 + $0x50] sm:$0xff]  }
 0x11d   :  { %v952_v13 = vmax.f32 %v948_v11, 0.0  ;;  %v2444_v11 = vld [vmem:[%s3215_s7 + $0x10] sm:$0xff]  }
 0x11e   :  { %v953_v14 = vmax.f32 %v949_v12, 0.0  ;;  %v2445_v12 = vld [vmem:[%s3215_s7 + $0x58] sm:$0xff]  }
 0x11f   :  { %v956_v18 = vpack.c.bf16 %v952_v13, %v952_v13  ;;  %v2446_v13 = vld [vmem:[%s3215_s7 + $0x18] sm:$0xff]  }
 0x120   :  { %v957_v15 = vpack.c.bf16 %v953_v14, %v953_v14  ;;  %v2447_v14 = vld [vmem:[%s3215_s7 + $0x60] sm:$0xff]  }
 0x122   :  { %1513 = vmatprep.mubr.bf16.mxu0 %v957_v15  ;;  %1595 = vmatprep.mubr.bf16.mxu1 %v957_v15  ;;  %v2448_v15 = vld [vmem:[%s3215_s7 + $0x20] sm:$0xff]  }
 0x123   :  { %1514 = vmatmul.mubr.bf16.vlgmr.msra.gmra.mrb[8].mxu0 %v956_v18  ;;  %1596 = vmatmul.mubr.bf16.vlgmr.msra.gmra.mrb[16].mxu1 %v956_v18  ;;  %v2452_v18 = vld [vmem:[%s3215_s7 + $0x88] sm:$0xff]  }
 0x124   :  { %1523 = vmatpush1.bf16.msra.mxu0 %v2403_v16  ;;  %1604 = vmatpush1.bf16.msra.mxu1 %v2406_v17  ;;  %v2450_v16 = vld [vmem:[%s3215_s7 + $0x68] sm:$0xff]  }
 0x125   :  { %1524 = vmatprep.subr.bf16.mxu0 %v2409_v19  ;;  %1605 = vmatprep.subr.bf16.mxu1 %v2482_v2  ;;  %v2451_v17 = vld [vmem:[%s3215_s7 + $0x28] sm:$0xff]   ;;  %v2453_v19 = vld [vmem:[%s3215_s7 + $0x70] sm:$0xff]  }
 0x128   :  { %1525 = vmatpush1.bf16.msra.mxu0 %v2407_v20  ;;  %1606 = vmatpush1.bf16.msra.mxu1 %v2410_v21  ;;  %v2454_v20 = vld [vmem:[%s3215_s7 + $0x30] sm:$0xff]  }
 0x129   :  { %1526 = vmatprep.subr.bf16.mxu0 %v2413_v22  ;;  %1607 = vmatprep.subr.bf16.mxu1 %v2482_v2  ;;  %v2455_v21 = vld [vmem:[%s3215_s7 + $0x90] sm:$0x3f]  }
 0x12a   :  { %v1813_v22 = vsel %vm1811_vm5, %v2455_v21, 0 }
 0x12c   :  { %1527 = vmatpush1.bf16.msra.mxu0 %v2411_v23  ;;  %1608 = vmatpush1.bf16.msra.mxu1 %v2414_v24  ;;  %v2456_v23 = vld [vmem:[%s3215_s7 + $0x78] sm:$0xff]  }
 0x12d   :  { %1528 = vmatprep.subr.bf16.mxu0 %v2417_v25  ;;  %1609 = vmatprep.subr.bf16.mxu1 %v2482_v2  ;;  %v2457_v24 = vld [vmem:[%s3215_s7 + $0x38] sm:$0xff]  }
 0x130   :  { %1529 = vmatpush1.bf16.msra.mxu0 %v2415_v26  ;;  %1610 = vmatpush1.bf16.msra.mxu1 %v2418_v27 }
 0x131   :  { %1530 = vmatprep.subr.bf16.mxu0 %v2421_v28  ;;  %1611 = vmatprep.subr.bf16.mxu1 %v2482_v2 }
 0x134   :  { %1531 = vmatpush1.bf16.msra.mxu0 %v2419_v29  ;;  %1612 = vmatpush1.bf16.msra.mxu1 %v2422_v30  ;;  %v1060_v30 = vld [vmem:[%s3214_s6] sm:$0x7] }
 0x135   :  { %1532 = vmatprep.subr.bf16.mxu0 %v2425_v31  ;;  %1613 = vmatprep.subr.bf16.mxu1 %v2482_v2  ;;  %v1073_v31 = vrot.slane %v1060_v30, %v938_v47 }
 0x136   :  { %v919_v35 = vpop.f32.mrb[4].mxu0 }
 0x137   :  { %v921_v36 = vpop.f32.mrb[5].mxu0 }
 0x138   :  { %1533 = vmatpush1.bf16.msra.mxu0 %v2423_v32  ;;  %1614 = vmatpush1.bf16.msra.mxu1 %v2426_v33  ;;  %v923_v37 = vpop.f32.mrb[6].mxu0  ;;  %v1065_v32 = vrot.slane %v1060_v30, %v930_v61  ;;  %v1069_v33 = vrot.slane %v1060_v30, %v934_v63 }
 0x139   :  { %1534 = vmatprep.subr.bf16.mxu0 %v2429_v34  ;;  %1615 = vmatprep.subr.bf16.mxu1 %v2482_v2  ;;  %v924_v40 = vpop.f32.mrb[7].mxu0 }
 0x13c   :  { %1535 = vmatpush1.bf16.msra.mxu0 %v2427_v38  ;;  %1616 = vmatpush1.bf16.msra.mxu1 %v2430_v39 }
 0x13d   :  { %1536 = vmatprep.subr.bf16.mxu0 %v2433_v41  ;;  %1617 = vmatprep.subr.bf16.mxu1 %v2482_v2 }
 0x140   :  { %1537 = vmatpush1.bf16.msra.mxu0 %v2431_v42  ;;  %1618 = vmatpush1.bf16.msra.mxu1 %v2434_v43 }
 0x141   :  { %1538 = vmatprep.subr.bf16.mxu0 %v2437_v44  ;;  %1619 = vmatprep.subr.bf16.mxu1 %v2482_v2 }
 0x144   :  { %1539 = vmatpush1.bf16.msra.mxu0 %v2435_v45  ;;  %1620 = vmatpush1.bf16.msra.mxu1 %v2438_v46 }
 0x145   :  { %2166 = vmatprep.subr.bf16.mxu0 %v2483_v7 }
 0x147   :  { %v878_v49 = vpop.f32.mrb[12].mxu1 }
 0x148   :  { %v879_v50 = vadd.f32 %v878_v49, %v3014_v51  ;;  %v880_v54 = vpop.f32.mrb[13].mxu1 }
 0x149   :  { %v881_v55 = vadd.f32 %v880_v54, %v3016_v52  ;;  %v882_v57 = vpop.f32.mrb[14].mxu1  ;;  %v2439_v52 = vld [vmem:[%s3215_s7 + $0x40] sm:$0xff]  }
 0x14a   :  { %v920_v2 = vadd.f32 %v919_v35, %v879_v50  ;;  %v883_v58 = vpop.f32.mrb[15].mxu1  ;;  %2140 = vmatprep.subr.bf16.mxu1 %v2439_v52 }
 0x14b   :  { %v922_v59 = vadd.f32 %v921_v36, %v881_v55  ;;  %v2097_v55 = vld [vmem:[%s3216_s8] ss:$0 sm:$0xff] }
 0x14c   :  { %v950_v0 = vadd.f32 %v939_v53, %v920_v2 }
 0x14d   :  { %v951_v1 = vadd.f32 %v943_v56, %v922_v59 }
 0x14e   :  { %v954_v3 = vmax.f32 %v950_v0, 0.0 }
 0x14f   :  { %v955_v4 = vmax.f32 %v951_v1, 0.0 }
 0x150   :  { %v958_v51 = vpack.c.bf16 %v954_v3, %v954_v3 }
 0x151   :  { %v959_v5 = vpack.c.bf16 %v955_v4, %v955_v4 }
 0x153   :  { %2095 = vmatprep.mubr.msk.bf16.mxu0 %vm1477_vm4, %v959_v5  ;;  %2096 = vmatprep.mubr.msk.bf16.mxu1 %vm1477_vm4, %v959_v5 }
 0x154   :  { %1555 = vmatmul.mubr.bf16.vlgmr.msra.gmra.mrb[8].mxu0 %v958_v51  ;;  %1636 = vmatmul.mubr.bf16.vlgmr.msra.gmra.mrb[20].mxu1 %v958_v51 }
 0x155   :  { %2141 = vmatpush3.bf16.msra.mxu1 %v2440_v62  ;;  %2167 = vmatpush3.bf16.msra.mxu0 %v2449_v9 }
 0x156   :  { %2142 = vmatprep.subr.bf16.mxu1 %v2441_v6  ;;  %2168 = vmatprep.subr.bf16.mxu0 %v2483_v7 }
 0x157   :  { %2172 = vmatprep.mubr.msk.bf16.mxu0 %vm2484_vm6, %v2483_v7 }
 0x159   :  { %2143 = vmatpush3.bf16.msra.mxu1 %v2442_v8  ;;  %2169 = vmatpush3.bf16.msra.mxu0 %v2452_v18 }
 0x15a   :  { %2144 = vmatprep.subr.bf16.mxu1 %v2443_v10  ;;  %2170 = vmatprep.subr.bf16.mxu0 %v2483_v7 }
 0x15d   :  { %2145 = vmatpush3.bf16.msra.mxu1 %v2444_v11  ;;  %2171 = vmatpush3.bf16.msra.mxu0 %v1813_v22 }
 0x15e   :  { %2146 = vmatprep.subr.bf16.mxu1 %v2445_v12 }
 0x161   :  { %2147 = vmatpush3.bf16.msra.mxu1 %v2446_v13 }
 0x162   :  { %2148 = vmatprep.subr.bf16.mxu1 %v2447_v14 }
 0x165   :  { %2149 = vmatpush3.bf16.msra.mxu1 %v2448_v15 }
 0x166   :  { %2150 = vmatprep.subr.bf16.mxu1 %v2450_v16 }
 0x169   :  { %2151 = vmatpush3.bf16.msra.mxu1 %v2451_v17 }
 0x16a   :  { %2152 = vmatprep.subr.bf16.mxu1 %v2453_v19 }
 0x16d   :  { %2153 = vmatpush3.bf16.msra.mxu1 %v2454_v20 }
 0x16e   :  { %2154 = vmatprep.subr.bf16.mxu1 %v2456_v23 }
 0x171   :  { %2155 = vmatpush3.bf16.msra.mxu1 %v2457_v24 }
 0x1f6   :  { %v2134_v25 = vpop.f32.mrb[16].mxu1 }
 0x1f7   :  { %v2135_v26 = vpop.f32.mrb[17].mxu1 }
 0x1f8   :  { %v2136_v27 = vadd.f32 %v2135_v26, %v2134_v25  ;;  %v2137_v28 = vpop.f32.mrb[18].mxu1 }
 0x1f9   :  { %v2138_v29 = vpop.f32.mrb[19].mxu1 }
 0x1fa   :  { %v1598_v34 = vadd.f32 %v2136_v27, %v1073_v31 }
 0x227   :  { %v1556_v35 = vpop.f32.mrb[8].mxu0  ;;  %v1637_v36 = vpop.f32.mrb[20].mxu1 }
 0x228   :  { %v2176_v37 = vadd.f32 %v1556_v35, %v1065_v32  ;;  %v1638_v38 = vadd.f32 %v1637_v36, %v1598_v34  ;;  %v1558_v39 = vpop.f32.mrb[9].mxu0  ;;  %v1639_v40 = vpop.f32.mrb[21].mxu1 }
 0x229   :  { %v2177_v41 = vadd.f32 %v1558_v39, %v1069_v33  ;;  %v1560_v42 = vpop.f32.mrb[10].mxu0  ;;  %v1640_v43 = vpop.f32.mrb[22].mxu1 }
 0x22a   :  { %v1643_v44 = vmax.f32 %v2176_v37, 0.0  ;;  %v1645_v45 = vmax.f32 %v1638_v38, 0.0  ;;  %v1561_v46 = vpop.f32.mrb[11].mxu0  ;;  %v1641_v47 = vpop.f32.mrb[23].mxu1 }
 0x22b   :  { %v1644_v48 = vmax.f32 %v2177_v41, 0.0 }
 0x22c   :  { %v1648_v61 = vpack.c.bf16 %v1645_v45, %v1645_v45  ;;  %v1646_v60 = vpack.c.bf16 %v1643_v44, %v1643_v44 }
 0x22d   :  { %v1647_v49 = vpack.c.bf16 %v1644_v48, %v1644_v48 }
 0x22e   :  { %2173 = vmatmul.mubr.msk.bf16.vlgmr.msra.gmra.mrb[12].mxu0 %vm1807_vm7, %v1648_v61 }
 0x22f   :  { %1847 = vmatprep.mubr.bf16.mxu1 %v1647_v49 }
 0x230   :  { %1848 = vmatmul.mubr.bf16.vlgmr.msra.gmra.mrb[24].mxu1 %v1646_v60 }
 0x301   :  { %v1889_v63 = vpop.f32.mrb[12].mxu0 }
 0x302   :  { %v2174_v50 = vpop.f32.mrb[13].mxu0 }
 0x303   :  { %v2156_v53 = vpop.f32.mrb[24].mxu1  ;;  %v1892_v54 = vpop.f32.mrb[14].mxu0 }
 0x304   :  { %v2157_v56 = vpop.f32.mrb[25].mxu1  ;;  %v2175_v57 = vpop.f32.mrb[15].mxu0 }
 0x305   :  { %v2158_v2 = vadd.f32 %v2157_v56, %v2156_v53  ;;  %v2159_v58 = vpop.f32.mrb[26].mxu1 }
 0x306   :  { %v2160_v59 = vpop.f32.mrb[27].mxu1 }
 0x307   :  { %v1850_v0 = vadd.f32 %v2158_v2, %v2097_v55 }
 0x309   :  { %v1890_v1 = vadd.f32 %v1889_v63, %v1850_v0 }
 0x30b   :  { %1895 = vst [vmem:[#allocation2] sm:$0xf] %v1890_v1 }
 0x30c   :  { %2469 = shalt.err (!%p2466_p4)
}
 0x30d   :  { %s2470_s17 = scalar_lea.hbm %s3217_s9, 64 }
 0x30e   :  { %p2471_p5 = scmp.ne.s32.totalorder %s3217_s9, %s2470_s17  ;;  %p2474_p6 = scmp.lt.u32.totalorder %s2470_s17, %s3217_s9 }
 0x310   :  { %p2476_p7 = pnand %p2474_p6, %p2471_p5 }
 0x312   :  { %2479 = shalt.err (!%p2476_p7)
}
 0x313   :  { %1905 = dma.vmem_to_hbm [thread:$0]  %s1903_s3, 64, %s3217_s9, [#allocation3]  }
 0x314   :  { %2480 = dma.done.wait [#allocation3], 64  }
 0x315   :  { %2481 = vsyncadd [#allocation3], 4294967232 }
 0x316   :  { %1909 = vsyncpa [#allocation3], 1 }

</bundles_post_ra>
